<compile_context>
chip_gen: v5e
topology: v5e:2x2
jax: 0.10.0
libtpu: 0.0.40
codegen_flags: <defaults>
</compile_context>

<pallas_src>
import jax
import jax.numpy as jnp
from jax.experimental import pallas as pl
from jax.experimental.pallas import tpu as pltpu


def _round_up(n: int, m: int) -> int:
    return ((n + m - 1) // m) * m


def mlp_logsoftmax_kernel(x_ref, w1_ref, w2_ref, w3_ref, b_ref, o_ref):
    hp = w1_ref.shape[1]   # padded hidden width (multiple of 128)
    op = w3_ref.shape[1]   # padded output width (multiple of 128)

    # fc1 + ReLU (bf16 matmul on the MXU, f32 accumulate, f32 bias/ReLU)
    h1 = jnp.dot(x_ref[...], w1_ref[...], preferred_element_type=jnp.float32)
    h1 = jnp.maximum(h1 + b_ref[0:1, :hp], 0.0)
    # fc2 + ReLU
    h2 = jnp.dot(h1.astype(w2_ref.dtype), w2_ref[...],
                 preferred_element_type=jnp.float32)
    h2 = jnp.maximum(h2 + b_ref[1:2, :hp], 0.0)
    # fc3 — padded output lanes carry a -1e30 bias baked in at pack time, so no
    # iota/compare/select is needed before the softmax.
    logits = jnp.dot(h2.astype(w3_ref.dtype), w3_ref[...],
                     preferred_element_type=jnp.float32)
    logits = logits + b_ref[2:3, :op]
    # Numerically stable log_softmax along the lane axis (f32 throughout).
    m = jnp.max(logits, axis=-1, keepdims=True)
    z = logits - m
    lse = jnp.log(jnp.sum(jnp.exp(z), axis=-1, keepdims=True))
    o_ref[...] = (z - lse).astype(o_ref.dtype)


def net_forward(x, kernel_params, out_size, *, batch_tile=1024):
    """Forward pass. `kernel_params` is the padded/packed tuple from pack_params."""
    w1, w2, w3, b_pack = kernel_params
    B, fin = x.shape
    hp = w1.shape[1]
    op = w3.shape[1]

    x = x.astype(jnp.bfloat16)  # halve x DMA bytes; matmul accumulates in f32
    cparams = pltpu.CompilerParams(
        dimension_semantics=("parallel",),           # v7x megacore over batch
        vmem_limit_bytes=32 * 1024 * 1024,           # headroom above v5e default
    )

    if B <= batch_tile:
        # Small/medium batch: single invocation, no grid / pipeline machinery.
        vmem = pl.BlockSpec(memory_space=pltpu.MemorySpace.VMEM)
        out = pl.pallas_call(
            mlp_logsoftmax_kernel,
            out_shape=jax.ShapeDtypeStruct((B, op), jnp.float32),
            in_specs=[vmem] * 5,
            out_specs=vmem,
        )(x, w1, w2, w3, b_pack)
    else:
        # Batched path: ragged grid over batch (no x padding, no out[:B] slice);
        # weights/biases use constant index_maps so they stay VMEM-resident.
        steps = pl.cdiv(B, batch_tile)
        if steps > 1 and steps % 2 == 1:
            # Make the step count even so v7x's two TensorCores split the
            # ("parallel",) batch axis evenly. Harmless on v5e/v6e.
            steps += 1
            batch_tile = _round_up(pl.cdiv(B, steps), 8)
            steps = pl.cdiv(B, batch_tile)
        out = pl.pallas_call(
            mlp_logsoftmax_kernel,
            out_shape=jax.ShapeDtypeStruct((B, op), jnp.float32),
            grid=(steps,),
            in_specs=[
                pl.BlockSpec((batch_tile, fin), lambda i: (i, 0)),
                # Constant index_map -> resident across grid steps (no re-DMA).
                pl.BlockSpec((fin, hp), lambda i: (0, 0)),
                pl.BlockSpec((hp, hp), lambda i: (0, 0)),
                pl.BlockSpec((hp, op), lambda i: (0, 0)),
                pl.BlockSpec(b_pack.shape, lambda i: (0, 0)),
            ],
            out_specs=pl.BlockSpec((batch_tile, op), lambda i: (i, 0)),
            compiler_params=cparams,
        )(x, w1, w2, w3, b_pack)
    # Trailing column slice kept for API parity with the PyTorch module; a
    # downstream consumer could instead take the padded (B, op) block lazily.
    return out[:, :out_size]


def init_params(key, input_size, hidden_size, output_size):
    """Raw (unpadded) params, mimicking nn.Linear's U(-1/sqrt(fan_in), 1/sqrt(fan_in))."""
    ks = jax.random.split(key, 6)

    def lin(kw, kb, fan_in, fan_out):
        bound = 1.0 / jnp.sqrt(jnp.float32(fan_in))
        w = jax.random.uniform(kw, (fan_in, fan_out), jnp.float32, -bound, bound)
        b = jax.random.uniform(kb, (fan_out,), jnp.float32, -bound, bound)
        return w, b

    w1, b1 = lin(ks[0], ks[1], input_size, hidden_size)
    w2, b2 = lin(ks[2], ks[3], hidden_size, hidden_size)
    w3, b3 = lin(ks[4], ks[5], hidden_size, output_size)
    return (w1, b1, w2, b2, w3, b3)


def pack_params(raw_params, input_size, hidden_size, output_size):
    """Zero-pad feature axes to multiples of 128, cast weights to bf16, pack the
    three biases into one lane-aligned f32 (8, W) buffer with the padded-logit
    mask (-1e30) baked into the fc3 bias row."""
    w1, b1, w2, b2, w3, b3 = raw_params
    hp = _round_up(hidden_size, 128)
    op = _round_up(output_size, 128)
    wb = max(hp, op)

    w1p = jnp.zeros((input_size, hp), jnp.bfloat16).at[:, :hidden_size].set(
        w1.astype(jnp.bfloat16))
    w2p = jnp.zeros((hp, hp), jnp.bfloat16).at[:hidden_size, :hidden_size].set(
        w2.astype(jnp.bfloat16))
    w3p = jnp.zeros((hp, op), jnp.bfloat16).at[:hidden_size, :output_size].set(
        w3.astype(jnp.bfloat16))

    b_pack = jnp.zeros((8, wb), jnp.float32)
    b_pack = b_pack.at[0, :hidden_size].set(b1)
    b_pack = b_pack.at[1, :hidden_size].set(b2)
    b_pack = b_pack.at[2, :output_size].set(b3)
    # Padded w3 columns are zero, so padded logits == bias exactly; -1e30 makes
    # them vanish in the softmax without any in-kernel masking ops.
    b_pack = b_pack.at[2, output_size:op].set(-1e30)
    return (w1p, w2p, w3p, b_pack)


def reference_forward(x, raw_params):
    w1, b1, w2, b2, w3, b3 = raw_params
    h = jnp.maximum(x @ w1 + b1, 0.0)
    h = jnp.maximum(h @ w2 + b2, 0.0)
    logits = h @ w3 + b3
    return jax.nn.log_softmax(logits, axis=-1)


if __name__ == "__main__":
    key = jax.random.PRNGKey(0)
    k_x, k_p, k_x2 = jax.random.split(key, 3)

    batch, input_size, hidden_size, output_size = 8, 32, 64, 16

    raw_params = init_params(k_p, input_size, hidden_size, output_size)
    kparams = pack_params(raw_params, input_size, hidden_size, output_size)

    # Small batch: exercises the no-grid single-shot path.
    x = jax.random.normal(k_x, (batch, input_size), jnp.float32)
    out = jax.block_until_ready(net_forward(x, kparams, output_size))
    ref = reference_forward(x, raw_params)
    assert out.shape == (batch, output_size)
    # bf16 weights/activations -> loose tolerance vs the f32 reference.
    assert jnp.allclose(out, ref, atol=3e-2, rtol=3e-2), "small-batch mismatch"

    # Larger batch: exercises the ragged batch-tiled "parallel" grid path with
    # VMEM-resident weights and the even-step-count (v7x megacore) adjustment.
    big_batch = 300
    x2 = jax.random.normal(k_x2, (big_batch, input_size), jnp.float32)
    out2 = jax.block_until_ready(
        net_forward(x2, kparams, output_size, batch_tile=128))
    ref2 = reference_forward(x2, raw_params)
    assert out2.shape == (big_batch, output_size)
    assert jnp.allclose(out2, ref2, atol=3e-2, rtol=3e-2), "batched mismatch"

    print("KERNEL_OK")
</pallas_src>

<mosaic_0001>
module attributes {stable_mosaic.version = 11 : i64} {
  func.func @mlp_logsoftmax_kernel(%arg0: memref<8x32xbf16, #tpu.memory_space<vmem>>, %arg1: memref<32x128xbf16, #tpu.memory_space<vmem>>, %arg2: memref<128x128xbf16, #tpu.memory_space<vmem>>, %arg3: memref<128x128xbf16, #tpu.memory_space<vmem>>, %arg4: memref<8x128xf32, #tpu.memory_space<vmem>>, %arg5: memref<8x128xf32, #tpu.memory_space<vmem>>) attributes {dimension_semantics = [], scalar_prefetch = 0 : i64, scratch_operands = 0 : i64, tpu.core_type = #tpu.core_type<tc>} {
    %c0 = arith.constant 0 : index
    %c0_0 = arith.constant 0 : index
    %0 = vector.load %arg0[%c0, %c0_0] : memref<8x32xbf16, #tpu.memory_space<vmem>>, vector<8x32xbf16>
    %c0_1 = arith.constant 0 : index
    %c0_2 = arith.constant 0 : index
    %1 = vector.load %arg1[%c0_1, %c0_2] : memref<32x128xbf16, #tpu.memory_space<vmem>>, vector<32x128xbf16>
    %cst = arith.constant dense<0.000000e+00> : vector<8x128xf32>
    %2 = tpu.matmul %0, %1, %cst {dimension_numbers = #tpu.dot_dimension_numbers<[1], [0], [0], [1], [0, 0, 1, 1], [], []>} : vector<8x32xbf16>, vector<32x128xbf16>, vector<8x128xf32> -> vector<8x128xf32>
    %c0_3 = arith.constant 0 : index
    %c0_4 = arith.constant 0 : index
    %3 = vector.load %arg4[%c0_3, %c0_4] : memref<8x128xf32, #tpu.memory_space<vmem>>, vector<1x128xf32>
    %4 = vector.broadcast %3 : vector<1x128xf32> to vector<8x128xf32>
    %5 = arith.addf %2, %4 : vector<8x128xf32>
    %cst_5 = arith.constant 0.000000e+00 : f32
    %6 = vector.broadcast %cst_5 : f32 to vector<8x128xf32>
    %7 = arith.maximumf %5, %6 : vector<8x128xf32>
    %8 = arith.truncf %7 : vector<8x128xf32> to vector<8x128xbf16>
    %c0_6 = arith.constant 0 : index
    %c0_7 = arith.constant 0 : index
    %9 = vector.load %arg2[%c0_6, %c0_7] : memref<128x128xbf16, #tpu.memory_space<vmem>>, vector<128x128xbf16>
    %cst_8 = arith.constant dense<0.000000e+00> : vector<8x128xf32>
    %10 = tpu.matmul %8, %9, %cst_8 {dimension_numbers = #tpu.dot_dimension_numbers<[1], [0], [0], [1], [0, 0, 1, 1], [], []>} : vector<8x128xbf16>, vector<128x128xbf16>, vector<8x128xf32> -> vector<8x128xf32>
    %c1 = arith.constant 1 : index
    %c0_9 = arith.constant 0 : index
    %11 = vector.load %arg4[%c1, %c0_9] : memref<8x128xf32, #tpu.memory_space<vmem>>, vector<1x128xf32>
    %12 = vector.broadcast %11 : vector<1x128xf32> to vector<8x128xf32>
    %13 = arith.addf %10, %12 : vector<8x128xf32>
    %cst_10 = arith.constant 0.000000e+00 : f32
    %14 = vector.broadcast %cst_10 : f32 to vector<8x128xf32>
    %15 = arith.maximumf %13, %14 : vector<8x128xf32>
    %16 = arith.truncf %15 : vector<8x128xf32> to vector<8x128xbf16>
    %c0_11 = arith.constant 0 : index
    %c0_12 = arith.constant 0 : index
    %17 = vector.load %arg3[%c0_11, %c0_12] : memref<128x128xbf16, #tpu.memory_space<vmem>>, vector<128x128xbf16>
    %cst_13 = arith.constant dense<0.000000e+00> : vector<8x128xf32>
    %18 = tpu.matmul %16, %17, %cst_13 {dimension_numbers = #tpu.dot_dimension_numbers<[1], [0], [0], [1], [0, 0, 1, 1], [], []>} : vector<8x128xbf16>, vector<128x128xbf16>, vector<8x128xf32> -> vector<8x128xf32>
    %c2 = arith.constant 2 : index
    %c0_14 = arith.constant 0 : index
    %19 = vector.load %arg4[%c2, %c0_14] : memref<8x128xf32, #tpu.memory_space<vmem>>, vector<1x128xf32>
    %20 = vector.broadcast %19 : vector<1x128xf32> to vector<8x128xf32>
    %21 = arith.addf %18, %20 : vector<8x128xf32>
    %cst_15 = arith.constant dense<0xFF800000> : vector<8xf32>
    %22 = vector.multi_reduction <maximumf>, %21, %cst_15 [1] : vector<8x128xf32> to vector<8xf32>
    %23 = vector.shape_cast %22 : vector<8xf32> to vector<8x1xf32>
    %24 = vector.broadcast %23 : vector<8x1xf32> to vector<8x128xf32>
    %25 = arith.subf %21, %24 : vector<8x128xf32>
    %26 = math.exp %25 : vector<8x128xf32>
    %cst_16 = arith.constant dense<0.000000e+00> : vector<8xf32>
    %27 = vector.multi_reduction <add>, %26, %cst_16 [1] : vector<8x128xf32> to vector<8xf32>
    %28 = vector.shape_cast %27 : vector<8xf32> to vector<8x1xf32>
    %29 = math.log %28 : vector<8x1xf32>
    %30 = vector.broadcast %29 : vector<8x1xf32> to vector<8x128xf32>
    %31 = arith.subf %25, %30 : vector<8x128xf32>
    %c0_17 = arith.constant 0 : index
    %c0_18 = arith.constant 0 : index
    %32 = vector.load %arg5[%c0_17, %c0_18] : memref<8x128xf32, #tpu.memory_space<vmem>>, vector<8x128xf32>
    tpu.vector_store %arg5[%c0_17, %c0_18], %31 {strides = array<i32>} : memref<8x128xf32, #tpu.memory_space<vmem>>, vector<8x128xf32>,
    return
  }
}

</mosaic_0001>

<bundles_post_ra>
// kernel: tpu_custom_call.1
= control target key start
LH: loop header
LB: loop body
LE: loop exit
PB: predicated region body
PF: predicated region fallthrough
CT: control target
= control target key end

     0   :  { %10 = vsyncpa [#allocation3], 0  ;;  %s638_s0 = inlined_call_operand.hbm [shape: bf16[8,32], index: 0, kind: input, shape index: {}]   ;;  %s639_s1 = inlined_call_operand.hbm [shape: bf16[32,128], index: 1, kind: input, shape index: {}]   ;;  %s640_s2 = inlined_call_operand.hbm [shape: bf16[128,128], index: 2, kind: input, shape index: {}]   ;;  %s641_s3 = inlined_call_operand.hbm [shape: bf16[128,128], index: 3, kind: input, shape index: {}]   ;;  %s642_s4 = inlined_call_operand.hbm [shape: f32[8,128], index: 4, kind: input, shape index: {}]   ;;  %s643_s5 = inlined_call_operand.hbm [shape: f32[8,128], index: 5, kind: output, shape index: {}]  }
   0x1   :  { %11 = vsyncpa [#allocation6], 0 }
   0x2   :  { %12 = vsyncpa [#allocation9], 0  ;;  %s29_s20 = sshll.u32 %s639_s1, 4  ;;  %s30_s20 = int_to_ptr.hbm [resolvable:$true] %s29_s20 }
   0x3   :  { %13 = vsyncpa [#allocation4], 0  ;;  %s582_s21 = smov [#allocation5]   ;;  %s55_s25 = sshll.u32 %s641_s3, 4  ;;  %s56_s25 = int_to_ptr.hbm [resolvable:$true] %s55_s25 }
   0x4   :  { %s31_s22 = sshll.u32 %s582_s21, 4  ;;  %s583_s26 = smov 64   ;;  %s32_s22 = int_to_ptr.vmem [resolvable:$true] %s31_s22 }
   0x5   :  { %s584_s27 = smov 4   ;;  %s585_s28 = smov [#allocation8]  }
   0x6   :  { %37 = dma.hbm_to_vmem [thread:$0]  %s30_s20, 256, %s32_s22, [#allocation6], %s583_s26, %s583_s26, %s584_s27  }
   0x7   :  { %s57_s29 = sshll.u32 %s585_s28, 4  ;;  %s19_s7 = sshll.u32 %s638_s0, 4  ;;  %s58_s29 = int_to_ptr.vmem [resolvable:$true] %s57_s29  ;;  %s20_s7 = int_to_ptr.hbm [resolvable:$true] %s19_s7 }
   0x8   :  { %63 = dma.hbm_to_vmem [thread:$0]  %s56_s25, 1024, %s58_s29, [#allocation9], %s583_s26, %s583_s26, %s584_s27  }
   0x9   :  { %s42_s9 = sshll.u32 %s640_s2, 4  ;;  %s586_s10 = smov [#allocation2]   ;;  %s43_s9 = int_to_ptr.hbm [resolvable:$true] %s42_s9 }
   0xa   :  { %s21_s11 = sshll.u32 %s586_s10, 4  ;;  %s587_s3 = smov [#allocation7]   ;;  %s22_s11 = int_to_ptr.vmem [resolvable:$true] %s21_s11 }
   0xb   :  { %24 = dma.hbm_to_vmem [thread:$0]  %s20_s7, 64, %s22_s11, [#allocation3]  }
   0xc   :  { %s44_s12 = sshll.u32 %s587_s3, 4  ;;  %s69_s15 = sshll.u32 %s642_s4, 4  ;;  %s45_s12 = int_to_ptr.vmem [resolvable:$true] %s44_s12  ;;  %s70_s15 = int_to_ptr.hbm [resolvable:$true] %s69_s15 }
   0xd   :  { %50 = dma.hbm_to_vmem [thread:$0]  %s43_s9, 1024, %s45_s12, [#allocation6], %s583_s26, %s583_s26, %s584_s27  }
   0xe   :  { %s588_s0 = smov [#allocation10]  }
   0xf   :  { %s71_s16 = sshll.u32 %s588_s0, 4  ;;  %s72_s16 = int_to_ptr.vmem [resolvable:$true] %s71_s16 }
  0x10   :  { %74 = dma.hbm_to_vmem [thread:$0]  %s70_s15, 128, %s72_s16, [#allocation9]  }
  0x11   :  { %574 = dma.done.wait [#allocation3], 64  }
  0x12   :  { %575 = vsyncadd [#allocation3], 4294967232 }
  0x13   :  { %576 = dma.done.wait [#allocation6], 1280  }
  0x14   :  { %577 = vsyncadd [#allocation6], 4294966016 }
  0x15   :  { %578 = dma.done.wait [#allocation9], 1152  }
  0x16   :  { %579 = vsyncadd [#allocation9], 4294966144  ;;  %v398_v0 = vld [vmem:[#allocation5 + $0x8] sm:$0xff]  ;;  %v397_v2 = vld [vmem:[#allocation5] sm:$0xff]  ;;  %vm115_vm0 = vcmask 261120   ;;  %s589_s2 = smov [#allocation11]  }
  0x17   :  { %v406_v1 = vld [vmem:[#allocation7 + $0x38] sm:$0xff]  ;;  %125 = vmatpush.bf16.msra.mxu0 %v398_v0  ;;  %v405_v3 = vld [vmem:[#allocation7 + $0x30] sm:$0xff]  ;;  %v96_v4 = vld [vmem:[#allocation2] sm:$0xf]  ;;  %s310_s4 = sshll.u32 %s589_s2, 4  ;;  %s312_s19 = sshll.u32 %s643_s5, 4  ;;  %s311_s4 = int_to_ptr.vmem [resolvable:$true] %s310_s4  ;;  %s313_s19 = int_to_ptr.hbm [resolvable:$true] %s312_s19 }
  0x18   :  { %200 = vmatpush.bf16.msra.mxu1 %v406_v1  ;;  %v404_v5 = vld [vmem:[#allocation7 + $0x28] sm:$0xff]  ;;  %v403_v6 = vld [vmem:[#allocation7 + $0x20] sm:$0xff]  ;;  %v402_v7 = vld [vmem:[#allocation7 + $0x18] sm:$0xff] }
  0x19   :  { %v401_v8 = vld [vmem:[#allocation7 + $0x10] sm:$0xff]  ;;  %v400_v9 = vld [vmem:[#allocation7 + $0x8] sm:$0xff]  ;;  %v399_v10 = vld [vmem:[#allocation7] sm:$0xff] }
  0x1a   :  { %v414_v11 = vld [vmem:[#allocation8 + $0x38] sm:$0xff]  ;;  %v413_v12 = vld [vmem:[#allocation8 + $0x30] sm:$0xff]  ;;  %v412_v13 = vld [vmem:[#allocation8 + $0x28] sm:$0xff] }
  0x1b   :  { %126 = vmatpush.bf16.msra.mxu0 %v397_v2  ;;  %281 = vmatpush.bf16.msra.mxu2 %v414_v11  ;;  %v411_v14 = vld [vmem:[#allocation8 + $0x20] sm:$0xff]  ;;  %v410_v15 = vld [vmem:[#allocation8 + $0x18] sm:$0xff]  ;;  %v409_v16 = vld [vmem:[#allocation8 + $0x10] sm:$0xff] }
  0x1c   :  { %201 = vmatpush.bf16.msra.mxu1 %v405_v3  ;;  %v423_v17 = vld [vmem:[#allocation10] ss:$0 sm:$0xff]  ;;  %v408_v23 = vld [vmem:[#allocation8 + $0x8] sm:$0xff]  ;;  %v424_v25 = vld [vmem:[#allocation10 + $0x1] ss:$0 sm:$0xff] }
  0x1d   :  { %v407_v24 = vld [vmem:[#allocation8] sm:$0xff] }
  0x1e   :  { %332 = vmatmul.msk.bf16.vlgmr.msra.gmra.mxu0 %vm115_vm0, %v96_v4  ;;  %v425_v31 = vld [vmem:[#allocation10 + $0x2] ss:$0 sm:$0xff] }
  0x1f   :  { %282 = vmatpush.bf16.msra.mxu2 %v413_v12 }
  0x20   :  { %202 = vmatpush.bf16.msra.mxu1 %v404_v5 }
  0x23   :  { %283 = vmatpush.bf16.msra.mxu2 %v412_v13 }
  0x24   :  { %203 = vmatpush.bf16.msra.mxu1 %v403_v6 }
  0x27   :  { %284 = vmatpush.bf16.msra.mxu2 %v411_v14 }
  0x28   :  { %204 = vmatpush.bf16.msra.mxu1 %v402_v7 }
  0x2b   :  { %285 = vmatpush.bf16.msra.mxu2 %v410_v15 }
  0x2c   :  { %205 = vmatpush.bf16.msra.mxu1 %v401_v8 }
  0x2f   :  { %286 = vmatpush.bf16.msra.mxu2 %v409_v16 }
  0x30   :  { %206 = vmatpush.bf16.msra.mxu1 %v400_v9 }
  0x33   :  { %287 = vmatpush.bf16.msra.mxu2 %v408_v23 }
  0x34   :  { %207 = vmatpush.bf16.msra.mxu1 %v399_v10 }
  0x37   :  { %288 = vmatpush.bf16.msra.mxu2 %v407_v24 }
  0x9b   :  { %v128_v18 = vpop.f32.mrf.mxu0 }
  0x9c   :  { %v129_v19 = vadd.f32 %v423_v17, %v128_v18 }
  0x9e   :  { %v132_v20 = vmax.f32 %v129_v19, 0.0 }
  0xa0   :  { %v133_v21 = vpack.c.bf16 %v132_v20, %v132_v20 }
  0xa2   :  { %208 = vmatmul.bf16.vlgmr.msra.gmra.mxu1 %v133_v21 }
  0xa3   :  { %v130_v22 = vpop.f32.mrf.mxu0 }
 0x11f   :  { %v209_v26 = vpop.f32.mrf.mxu1 }
 0x120   :  { %v210_v27 = vadd.f32 %v424_v25, %v209_v26 }
 0x122   :  { %v213_v28 = vmax.f32 %v210_v27, 0.0 }
 0x124   :  { %v214_v29 = vpack.c.bf16 %v213_v28, %v213_v28 }
 0x126   :  { %289 = vmatmul.bf16.vlgmr.msra.gmra.mxu2 %v214_v29 }
 0x127   :  { %v211_v30 = vpop.f32.mrf.mxu1 }
 0x1a9   :  { %v290_v32 = vpop.f32.mrf.mxu2 }
 0x1aa   :  { %v291_v33 = vadd.f32 %v425_v31, %v290_v32 }
 0x1ac   :  { %294 = vmax.xlane.f32.xlu0 %v291_v33 }
 0x1b1   :  { %v292_v34 = vpop.f32.mrf.mxu2 }
 0x21f   :  { %v295_v35 = vpop.xlane.xlu0 %294 }
 0x220   :  { %v296_v36 = vsub.f32 %v291_v33, %v295_v35 }
 0x222   :  { %v297_v37 = vmul.f32 1.442695, %v296_v36 }
 0x224   :  { %426 = vpow2.f32 %v297_v37 }
 0x22a   :  { %v427_v38 = vpop.eup %426 }
 0x22b   :  { %299 = vadd.xlane.f32.xlu0 %v427_v38 }
 0x29e   :  { %v300_v39 = vpop.xlane.xlu0 %299 }
 0x29f   :  { %428 = vlog2.f32 %v300_v39 }
 0x2a5   :  { %v429_v40 = vpop.eup %428 }
 0x2a6   :  { %v302_v41 = vmul.f32 0.6931472, %v429_v40 }
 0x2a8   :  { %v303_v42 = vsub.f32 %v296_v36, %v302_v41 }
 0x2aa   :  { %304 = vst [vmem:[#allocation11] sm:$0xff] %v303_v42 }
 0x2ab   :  { %315 = dma.vmem_to_hbm [thread:$0]  %s311_s4, 128, %s313_s19, [#allocation4]  }
 0x2ac   :  { %580 = dma.done.wait [#allocation4], 128  }
 0x2ad   :  { %581 = vsyncadd [#allocation4], 4294967168 }
 0x2ae   :  { %320 = vsyncpa [#allocation3], 1 }
 0x2af   :  { %321 = vsyncpa [#allocation6], 1 }
 0x2b0   :  { %322 = vsyncpa [#allocation9], 1 }
 0x2b1   :  { %323 = vsyncpa [#allocation4], 1 }

</bundles_post_ra>
